<compile_context>
chip_gen: v6e
topology: v6e:2x2x1
jax: 0.10.0
libtpu: 0.0.40
codegen_flags: <defaults>
</compile_context>

<pallas_src>
import functools

import jax
import jax.numpy as jnp
from jax import lax
from jax.experimental import pallas as pl
from jax.experimental.pallas import tpu as pltpu

_LANE = 128                         # lane width / feature padding target
_TM_TARGET = 512                    # row-tile target (sweep 512-2048)
_TK_TARGET = 1024                   # contraction (node) tile target
_H_RESIDENT_BYTES = 8 * 1024 * 1024 # keep H fully VMEM-resident below this
_VMEM_LIMIT = 48 * 1024 * 1024      # v7x-safe scoped VMEM budget


def _pick_tile(n, target):
    """Largest multiple of 128 <= target that divides n (n % 128 == 0)."""
    t = min(target, n)
    while n % t:
        t -= _LANE
    return max(t, _LANE)


# ---------------------------------------------------------------------------
# Kernels
# ---------------------------------------------------------------------------
def _linear_kernel(x_ref, w_ref, b_ref, o_ref, *, act):
    """o = (relu)(x @ w + b) for one lane-dense row tile of x."""
    y = jnp.dot(x_ref[...], w_ref[...], preferred_element_type=jnp.float32)
    y = y + b_ref[...]
    if act:
        y = jnp.maximum(y, 0.0)
    o_ref[...] = y.astype(o_ref.dtype)


def _mp_layer_kernel(*refs, tk, l2norm, fuse_head, h_resident):
    """Fused GCN layer: o = relu((A @ H) @ W + b) [+ l2norm] [+ head].

    Grid = (row tiles, K tiles). A @ H is accumulated over K into a VMEM
    scratch; the dense transform + bias + ReLU (+ stage-level L2 norm and the
    fused postprocess head on the last layer) run once on the last K step, so
    the [tm, d] aggregate never touches HBM.
    """
    if fuse_head:
        a_ref, h_ref, w_ref, b_ref, hw_ref, hb_ref, o_ref, acc_ref = refs
    else:
        a_ref, h_ref, w_ref, b_ref, o_ref, acc_ref = refs
        hw_ref = hb_ref = None

    k = pl.program_id(1)

    @pl.when(k == 0)
    def _():
        acc_ref[...] = jnp.zeros_like(acc_ref)

    if h_resident:
        # H is the whole (n, d) slab, resident in VMEM; slice the K chunk.
        koff = pl.multiple_of(k * tk, tk)
        h_blk = h_ref[pl.ds(koff, tk), :]
    else:
        h_blk = h_ref[...]

    acc_ref[...] += jnp.dot(a_ref[...], h_blk,
                            preferred_element_type=jnp.float32)

    @pl.when(k == pl.num_programs(1) - 1)
    def _():
        y = jnp.dot(acc_ref[...], w_ref[...],
                    preferred_element_type=jnp.float32)
        y = jnp.maximum(y + b_ref[...], 0.0)
        if l2norm:
            # F.normalize(p=2, dim=-1), eps folded via rsqrt (EUP slot).
            ssq = jnp.sum(y * y, axis=-1, keepdims=True)
            y = y * lax.rsqrt(jnp.maximum(ssq, 1e-24))
        if fuse_head:
            y = jnp.dot(y, hw_ref[...],
                        preferred_element_type=jnp.float32) + hb_ref[...]
        o_ref[...] = y.astype(o_ref.dtype)


# ---------------------------------------------------------------------------
# Pallas wrappers
# ---------------------------------------------------------------------------
def linear(x, w, b, *, act, out_dtype=jnp.float32):
    n, d_in = x.shape
    d_out = w.shape[1]
    tm = _pick_tile(n, _TM_TARGET)
    return pl.pallas_call(
        functools.partial(_linear_kernel, act=act),
        out_shape=jax.ShapeDtypeStruct((n, d_out), out_dtype),
        grid_spec=pltpu.PrefetchScalarGridSpec(
            num_scalar_prefetch=0,
            grid=(n // tm,),
            in_specs=[
                pl.BlockSpec((tm, d_in), lambda i: (i, 0)),
                pl.BlockSpec((d_in, d_out), lambda i: (0, 0)),
                pl.BlockSpec((1, d_out), lambda i: (0, 0)),
            ],
            out_specs=pl.BlockSpec((tm, d_out), lambda i: (i, 0)),
        ),
        compiler_params=pltpu.CompilerParams(
            dimension_semantics=("parallel",),
            vmem_limit_bytes=_VMEM_LIMIT,
        ),
    )(x, w, b)


def mp_layer(a_hat, h, w, b, *, l2norm, head=None):
    """One fused Roland layer: relu(A_hat @ h @ w + b) [+ l2norm] [+ head].

    a_hat, h are bf16 (MXU-native); w/b/accumulator/epilogue stay f32.
    """
    n, d = h.shape
    assert a_hat.shape == (n, n)
    tm = _pick_tile(n, _TM_TARGET)
    tk = _pick_tile(n, _TK_TARGET)
    h_resident = (n * d * h.dtype.itemsize) <= _H_RESIDENT_BYTES

    fuse_head = head is not None
    if fuse_head:
        hw, hb = head
        d_out = hw.shape[1]
        out_dtype = jnp.float32          # final logits
    else:
        d_out = d
        out_dtype = jnp.bfloat16         # next layer streams H in bf16

    in_specs = [
        pl.BlockSpec((tm, tk), lambda i, k: (i, k)),            # A tile
        (pl.BlockSpec((n, d), lambda i, k: (0, 0)) if h_resident # H resident
         else pl.BlockSpec((tk, d), lambda i, k: (k, 0))),       # H streamed
        pl.BlockSpec((d, d), lambda i, k: (0, 0)),               # W
        pl.BlockSpec((1, d), lambda i, k: (0, 0)),               # b
    ]
    args = [a_hat, h, w, b]
    if fuse_head:
        in_specs += [
            pl.BlockSpec((d, d_out), lambda i, k: (0, 0)),       # post_w
            pl.BlockSpec((1, d_out), lambda i, k: (0, 0)),       # post_b
        ]
        args += [hw, hb]

    return pl.pallas_call(
        functools.partial(_mp_layer_kernel, tk=tk, l2norm=l2norm,
                          fuse_head=fuse_head, h_resident=h_resident),
        out_shape=jax.ShapeDtypeStruct((n, d_out), out_dtype),
        grid_spec=pltpu.PrefetchScalarGridSpec(
            num_scalar_prefetch=0,
            grid=(n // tm, n // tk),
            in_specs=in_specs,
            out_specs=pl.BlockSpec((tm, d_out), lambda i, k: (i, 0)),
            scratch_shapes=[pltpu.VMEM((tm, d), jnp.float32)],
        ),
        compiler_params=pltpu.CompilerParams(
            dimension_semantics=("parallel", "arbitrary"),
            vmem_limit_bytes=_VMEM_LIMIT,
        ),
    )(*args)


# ---------------------------------------------------------------------------
# Roland forward (preprocess -> mp stack (+fused l2norm+head) )
# ---------------------------------------------------------------------------
def roland_forward(x, a_hat, params, *, num_layers):
    assert num_layers >= 1
    a_bf = a_hat.astype(jnp.bfloat16)
    # Preprocess: node feature encoder (+ ReLU); H carried in bf16.
    h = linear(x, params["pre_w"], params["pre_b"], act=True,
               out_dtype=jnp.bfloat16)
    # Message-passing stage; stage-level l2norm and the postprocess head are
    # fused into the last layer's epilogue (no extra HBM round trip of H).
    for l in range(num_layers):
        last = (l == num_layers - 1)
        h = mp_layer(
            a_bf, h, params[f"mp_w{l}"], params[f"mp_b{l}"],
            l2norm=last,
            head=(params["post_w"], params["post_b"]) if last else None,
        )
    return h


# ---------------------------------------------------------------------------
# Parameter / input construction and lane-padding glue (plain JAX)
# ---------------------------------------------------------------------------
def _round_up(v, m):
    return ((v + m - 1) // m) * m


def _pad2(x, rows, cols):
    r, c = x.shape
    return jnp.pad(x, ((0, rows - r), (0, cols - c)))


def make_params(key, dim_in, dim_inner, dim_out, num_layers):
    keys = jax.random.split(key, 2 + num_layers)
    params = {
        "pre_w": 0.1 * jax.random.normal(keys[0], (dim_in, dim_inner), jnp.float32),
        "pre_b": jnp.zeros((1, dim_inner), jnp.float32),
        "post_w": 0.1 * jax.random.normal(keys[1], (dim_inner, dim_out), jnp.float32),
        "post_b": jnp.zeros((1, dim_out), jnp.float32),
    }
    for l in range(num_layers):
        params[f"mp_w{l}"] = 0.1 * jax.random.normal(
            keys[2 + l], (dim_inner, dim_inner), jnp.float32
        )
        params[f"mp_b{l}"] = jnp.zeros((1, dim_inner), jnp.float32)
    return params


def pad_params(params, dim_in, dim_inner, dim_out, num_layers):
    din_p = _round_up(dim_in, _LANE)
    dinner_p = _round_up(dim_inner, _LANE)
    dout_p = _round_up(dim_out, _LANE)
    padded = {
        "pre_w": _pad2(params["pre_w"], din_p, dinner_p),
        "pre_b": _pad2(params["pre_b"], 1, dinner_p),
        "post_w": _pad2(params["post_w"], dinner_p, dout_p),
        "post_b": _pad2(params["post_b"], 1, dout_p),
    }
    for l in range(num_layers):
        padded[f"mp_w{l}"] = _pad2(params[f"mp_w{l}"], dinner_p, dinner_p)
        padded[f"mp_b{l}"] = _pad2(params[f"mp_b{l}"], 1, dinner_p)
    return padded


def make_norm_adjacency(key, n):
    """Symmetric random graph + self loops, D^{-1/2} (A+I) D^{-1/2}."""
    a = (jax.random.uniform(key, (n, n)) < 0.25).astype(jnp.float32)
    a = jnp.maximum(a, a.T)
    a = a + jnp.eye(n, dtype=jnp.float32)
    a = jnp.minimum(a, 1.0)
    deg = jnp.sum(a, axis=-1)
    d_inv_sqrt = 1.0 / jnp.sqrt(deg)
    return a * d_inv_sqrt[:, None] * d_inv_sqrt[None, :]


if __name__ == "__main__":
    N = 16          # nodes
    DIM_IN = 8      # raw node feature dim
    DIM_INNER = 32  # cfg.gnn.dim_inner
    DIM_OUT = 4     # model output dim
    LAYERS_MP = 2   # cfg.gnn.layers_mp

    root = jax.random.PRNGKey(0)
    k_x, k_a, k_p = jax.random.split(root, 3)

    x = jax.random.normal(k_x, (N, DIM_IN), jnp.float32)
    a_hat = make_norm_adjacency(k_a, N)
    params = make_params(k_p, DIM_IN, DIM_INNER, DIM_OUT, LAYERS_MP)

    # Zero-pad rows / features to 128 so MXU tiles are lane-dense and stores
    # unmasked; padded rows/lanes stay exactly zero through the network
    # (zero padded columns of A_hat neutralize them) and are sliced away.
    N_PAD = _round_up(N, _LANE)
    DIN_PAD = _round_up(DIM_IN, _LANE)
    DOUT_PAD = _round_up(DIM_OUT, _LANE)
    x_pad = _pad2(x, N_PAD, DIN_PAD)
    a_pad = _pad2(a_hat, N_PAD, N_PAD)
    pparams = pad_params(params, DIM_IN, DIM_INNER, DIM_OUT, LAYERS_MP)

    out_pad = roland_forward(x_pad, a_pad, pparams, num_layers=LAYERS_MP)
    out_pad = jax.block_until_ready(out_pad)
    out = out_pad[:N, :DIM_OUT]

    # Pure-JAX reference of the same math (unpadded), with the same bf16
    # casts for A_hat / H and f32 accumulation, so the check stays tight.
    hp = lax.Precision.HIGHEST
    h_r = jnp.maximum(
        jnp.dot(x, params["pre_w"], precision=hp) + params["pre_b"], 0.0
    )
    a_bf = a_hat.astype(jnp.bfloat16)
    for l in range(LAYERS_MP):
        agg = jnp.dot(a_bf, h_r.astype(jnp.bfloat16),
                      preferred_element_type=jnp.float32)
        h_r = jnp.maximum(
            jnp.dot(agg, params[f"mp_w{l}"], precision=hp) + params[f"mp_b{l}"],
            0.0,
        )
    ssq = jnp.sum(h_r * h_r, axis=-1, keepdims=True)
    h_r = h_r * lax.rsqrt(jnp.maximum(ssq, 1e-24))
    out_ref = jnp.dot(h_r, params["post_w"], precision=hp) + params["post_b"]

    assert out.shape == (N, DIM_OUT)
    assert out_pad.shape == (N_PAD, DOUT_PAD)
    assert jnp.allclose(out, out_ref, atol=2e-3, rtol=2e-3), (
        float(jnp.max(jnp.abs(out - out_ref)))
    )

    print("KERNEL_OK")
</pallas_src>

<mosaic_0001>
module attributes {stable_mosaic.version = 11 : i64} {
  func.func @_linear_kernel(%arg0: i32, %arg1: memref<128x128xf32, #tpu.memory_space<vmem>>, %arg2: memref<128x128xf32, #tpu.memory_space<vmem>>, %arg3: memref<1x128xf32, #tpu.memory_space<vmem>>, %arg4: memref<128x128xbf16, #tpu.memory_space<vmem>>) attributes {dimension_semantics = [#tpu.dimension_semantics<parallel>], iteration_bounds = array<i64: 1>, scalar_prefetch = 0 : i64, scratch_operands = 0 : i64, tpu.core_type = #tpu.core_type<tc>, window_params = [{transform_indices = @transform_0, window_bounds = array<i64: 128, 128>}, {pipeline_mode = #tpu.pipeline_mode<synchronous>, transform_indices = @transform_1, window_bounds = array<i64: 128, 128>}, {pipeline_mode = #tpu.pipeline_mode<synchronous>, transform_indices = @transform_2, window_bounds = array<i64: 1, 128>}, {transform_indices = @transform_3, window_bounds = array<i64: 128, 128>}]} {
    %c0 = arith.constant 0 : index
    %c0_0 = arith.constant 0 : index
    %0 = vector.load %arg1[%c0, %c0_0] : memref<128x128xf32, #tpu.memory_space<vmem>>, vector<128x128xf32>
    %c0_1 = arith.constant 0 : index
    %c0_2 = arith.constant 0 : index
    %1 = vector.load %arg2[%c0_1, %c0_2] : memref<128x128xf32, #tpu.memory_space<vmem>>, vector<128x128xf32>
    %cst = arith.constant dense<0.000000e+00> : vector<128x128xf32>
    %2 = tpu.matmul %0, %1, %cst {dimension_numbers = #tpu.dot_dimension_numbers<[1], [0], [0], [1], [0, 0, 1, 1], [], []>} : vector<128x128xf32>, vector<128x128xf32>, vector<128x128xf32> -> vector<128x128xf32>
    %c0_3 = arith.constant 0 : index
    %c0_4 = arith.constant 0 : index
    %3 = vector.load %arg3[%c0_3, %c0_4] : memref<1x128xf32, #tpu.memory_space<vmem>>, vector<1x128xf32>
    %4 = vector.broadcast %3 : vector<1x128xf32> to vector<128x128xf32>
    %5 = arith.addf %2, %4 : vector<128x128xf32>
    %cst_5 = arith.constant 0.000000e+00 : f32
    %6 = vector.broadcast %cst_5 : f32 to vector<128x128xf32>
    %7 = arith.maximumf %5, %6 : vector<128x128xf32>
    %8 = arith.truncf %7 : vector<128x128xf32> to vector<128x128xbf16>
    %c0_6 = arith.constant 0 : index
    %c0_7 = arith.constant 0 : index
    %9 = vector.load %arg4[%c0_6, %c0_7] : memref<128x128xbf16, #tpu.memory_space<vmem>>, vector<128x128xbf16>
    tpu.vector_store %arg4[%c0_6, %c0_7], %8 {strides = array<i32>} : memref<128x128xbf16, #tpu.memory_space<vmem>>, vector<128x128xbf16>,
    return
  }
  func.func @transform_0(%arg0: i32) -> (i32, i32) {
    %c0_i32 = arith.constant 0 : i32
    %c0_i32_0 = arith.constant 0 : i32
    return %arg0, %c0_i32 : i32, i32
  }
  func.func @transform_1(%arg0: i32) -> (i32, i32) {
    %c0_i32 = arith.constant 0 : i32
    %c0_i32_0 = arith.constant 0 : i32
    %c0_i32_1 = arith.constant 0 : i32
    return %c0_i32, %c0_i32_0 : i32, i32
  }
  func.func @transform_2(%arg0: i32) -> (i32, i32) {
    %c0_i32 = arith.constant 0 : i32
    %c0_i32_0 = arith.constant 0 : i32
    %c0_i32_1 = arith.constant 0 : i32
    return %c0_i32, %c0_i32_0 : i32, i32
  }
  func.func @transform_3(%arg0: i32) -> (i32, i32) {
    %c0_i32 = arith.constant 0 : i32
    %c0_i32_0 = arith.constant 0 : i32
    return %arg0, %c0_i32 : i32, i32
  }
}

</mosaic_0001>

<bundles_post_ra>
// kernel: tpu_custom_call.1
= control target key start
LH: loop header
LB: loop body
LE: loop exit
PB: predicated region body
PF: predicated region fallthrough
CT: control target
= control target key end

     0   :  { %8 = vsyncpa [#allocation3], 0  ;;  %s653_s0 = inlined_call_operand.hbm [shape: f32[128,128], index: 0, kind: input, shape index: {}]   ;;  %s654_s1 = inlined_call_operand.hbm [shape: f32[128,128], index: 1, kind: input, shape index: {}]   ;;  %s655_s2 = inlined_call_operand.vmem [shape: f32[1,128], index: 2, kind: input, shape index: {}]   ;;  %s656_s3 = inlined_call_operand.hbm [shape: bf16[128,128], index: 3, kind: output, shape index: {}]  }
   0x1   :  { %9 = vsyncpa [#allocation6], 0 }
   0x2   :  { %10 = vsyncpa [#allocation4], 0  ;;  %s614_s12 = smov [#allocation2]  }
   0x3   :  { %s16_s13 = sshll.u32 %s614_s12, 4  ;;  %s17_s13 = int_to_ptr.vmem [resolvable:$true] %s16_s13 }
   0x4   :  { %s556_s14 = scalar_lea.vmem %s17_s13, 2048  ;;  %p561_p1 = scmp.lt.s32.totalorder %s17_s13, %s17_s13 }
   0x5   :  { %p557_p0 = scmp.ne.s32.totalorder %s17_s13, %s556_s14  ;;  %p562_p2 = scmp.lt.s32.totalorder %s556_s14, %s556_s14 }
   0x7   :  { %p563_p3 = por %p562_p2, %p561_p1 }
   0x9   :  { %p564_p4 = pnand %p563_p3, %p557_p0 }
   0xb   :  { %567 = shalt.err (!%p564_p4)
}
   0xc   :  { %s615_s15 = smov 128   ;;  %s616_s16 = smov 8  }
   0xd   :  { %22 = dma.hbm_to_vmem [thread:$0]  %s653_s0, 2048, %s17_s13, [#allocation3], %s615_s15, %s615_s15, %s616_s16  }
   0xe   :  { %s617_s19 = smov [#allocation5]  }
   0xf   :  { %s28_s20 = sshll.u32 %s617_s19, 4  ;;  %s29_s20 = int_to_ptr.vmem [resolvable:$true] %s28_s20 }
  0x10   :  { %s576_s21 = scalar_lea.vmem %s29_s20, 2048  ;;  %p581_p6 = scmp.lt.s32.totalorder %s29_s20, %s29_s20 }
  0x11   :  { %p577_p5 = scmp.ne.s32.totalorder %s29_s20, %s576_s21  ;;  %p582_p7 = scmp.lt.s32.totalorder %s576_s21, %s576_s21 }
  0x13   :  { %p583_p8 = por %p582_p7, %p581_p6 }
  0x15   :  { %p584_p9 = pnand %p583_p8, %p577_p5 }
  0x17   :  { %587 = shalt.err (!%p584_p9)
}
  0x18   :  { %34 = dma.hbm_to_vmem [thread:$0]  %s654_s1, 2048, %s29_s20, [#allocation6], %s615_s15, %s615_s15, %s616_s16  }
  0x19   :  { %608 = dma.done.wait [#allocation3], 2048  }
  0x1a   :  { %609 = vsyncadd [#allocation3], 4294965248 }
  0x1b   :  { %610 = dma.done.wait [#allocation6], 2048  }
  0x1c   :  { %611 = vsyncadd [#allocation6], 4294965248  ;;  %v74_v0 = vld [vmem:[#allocation5 + $0x78] sm:$0xff]  ;;  %v73_v1 = vld [vmem:[#allocation5 + $0x70] sm:$0xff] }
  0x1d   :  { %453 = vmatprep.subr.mxu0 %v74_v0  ;;  %509 = vmatprep.subr.mxu1 %v74_v0  ;;  %v72_v2 = vld [vmem:[#allocation5 + $0x68] sm:$0xff]  ;;  %v71_v3 = vld [vmem:[#allocation5 + $0x60] sm:$0xff]  ;;  %v70_v4 = vld [vmem:[#allocation5 + $0x58] sm:$0xff] }
  0x1e   :  { %454 = vmatpush3.msra.mxu0 %v74_v0  ;;  %525 = vmatpush3.msra.mxu1 %v74_v0  ;;  %v69_v5 = vld [vmem:[#allocation5 + $0x50] sm:$0xff]  ;;  %v68_v6 = vld [vmem:[#allocation5 + $0x48] sm:$0xff]  ;;  %v67_v7 = vld [vmem:[#allocation5 + $0x40] sm:$0xff] }
  0x1f   :  { %455 = vmatprep.subr.mxu0 %v73_v1  ;;  %510 = vmatprep.subr.mxu1 %v73_v1  ;;  %v66_v8 = vld [vmem:[#allocation5 + $0x38] sm:$0xff]  ;;  %v65_v9 = vld [vmem:[#allocation5 + $0x30] sm:$0xff]  ;;  %v64_v10 = vld [vmem:[#allocation5 + $0x28] sm:$0xff] }
  0x20   :  { %456 = vmatpush3.msra.mxu0 %v73_v1  ;;  %526 = vmatpush3.msra.mxu1 %v73_v1  ;;  %v63_v11 = vld [vmem:[#allocation5 + $0x20] sm:$0xff]  ;;  %v62_v12 = vld [vmem:[#allocation5 + $0x18] sm:$0xff]  ;;  %v61_v13 = vld [vmem:[#allocation5 + $0x10] sm:$0xff] }
  0x21   :  { %457 = vmatprep.subr.mxu0 %v72_v2  ;;  %511 = vmatprep.subr.mxu1 %v72_v2  ;;  %v60_v14 = vld [vmem:[#allocation5 + $0x8] sm:$0xff]  ;;  %v59_v15 = vld [vmem:[#allocation5] sm:$0xff]  ;;  %v45_v20 = vld [vmem:[#allocation2 + $0x10] sm:$0xff] }
  0x22   :  { %458 = vmatpush3.msra.mxu0 %v72_v2  ;;  %527 = vmatpush3.msra.mxu1 %v72_v2  ;;  %v43_v16 = vld [vmem:[#allocation2] sm:$0xff]  ;;  %v44_v18 = vld [vmem:[#allocation2 + $0x8] sm:$0xff]  ;;  %v53_v21 = vld [vmem:[#allocation2 + $0x50] sm:$0xff] }
  0x23   :  { %459 = vmatprep.subr.mxu0 %v71_v3  ;;  %512 = vmatprep.subr.mxu1 %v71_v3  ;;  %v51_v17 = vld [vmem:[#allocation2 + $0x40] sm:$0xff]  ;;  %v52_v19 = vld [vmem:[#allocation2 + $0x48] sm:$0xff]  ;;  %v46_v22 = vld [vmem:[#allocation2 + $0x18] sm:$0xff] }
  0x24   :  { %460 = vmatpush3.msra.mxu0 %v71_v3  ;;  %528 = vmatpush3.msra.mxu1 %v71_v3  ;;  %v54_v23 = vld [vmem:[#allocation2 + $0x58] sm:$0xff]  ;;  %v47_v24 = vld [vmem:[#allocation2 + $0x20] sm:$0xff]  ;;  %v48_v26 = vld [vmem:[#allocation2 + $0x28] sm:$0xff] }
  0x25   :  { %461 = vmatprep.subr.mxu0 %v70_v4  ;;  %513 = vmatprep.subr.mxu1 %v70_v4  ;;  %v55_v25 = vld [vmem:[#allocation2 + $0x60] sm:$0xff]  ;;  %v56_v27 = vld [vmem:[#allocation2 + $0x68] sm:$0xff]  ;;  %v49_v28 = vld [vmem:[#allocation2 + $0x30] sm:$0xff] }
  0x26   :  { %462 = vmatpush3.msra.mxu0 %v70_v4  ;;  %529 = vmatpush3.msra.mxu1 %v70_v4  ;;  %v57_v29 = vld [vmem:[#allocation2 + $0x70] sm:$0xff]  ;;  %v50_v30 = vld [vmem:[#allocation2 + $0x38] sm:$0xff]  ;;  %v341_v32 = vld [vmem:[%s655_s2] ss:$0 sm:$0xff]  ;;  %s618_s2 = smov [#allocation7]  }
  0x27   :  { %463 = vmatprep.subr.mxu0 %v69_v5  ;;  %514 = vmatprep.subr.mxu1 %v69_v5  ;;  %v58_v31 = vld [vmem:[#allocation2 + $0x78] sm:$0xff]  ;;  %s328_s24 = sshll.u32 %s618_s2, 4  ;;  %s329_s24 = int_to_ptr.vmem [resolvable:$true] %s328_s24 }
  0x28   :  { %464 = vmatpush3.msra.mxu0 %v69_v5  ;;  %530 = vmatpush3.msra.mxu1 %v69_v5  ;;  %s588_s25 = scalar_lea.vmem %s329_s24, 1024  ;;  %p593_p11 = scmp.lt.s32.totalorder %s329_s24, %s329_s24 }
  0x29   :  { %465 = vmatprep.subr.mxu0 %v68_v6  ;;  %515 = vmatprep.subr.mxu1 %v68_v6  ;;  %p589_p10 = scmp.ne.s32.totalorder %s329_s24, %s588_s25  ;;  %p594_p12 = scmp.lt.s32.totalorder %s588_s25, %s588_s25 }
  0x2a   :  { %466 = vmatpush3.msra.mxu0 %v68_v6  ;;  %531 = vmatpush3.msra.mxu1 %v68_v6 }
  0x2b   :  { %467 = vmatprep.subr.mxu0 %v67_v7  ;;  %516 = vmatprep.subr.mxu1 %v67_v7  ;;  %p595_p13 = por %p594_p12, %p593_p11 }
  0x2c   :  { %468 = vmatpush3.msra.mxu0 %v67_v7  ;;  %532 = vmatpush3.msra.mxu1 %v67_v7 }
  0x2d   :  { %469 = vmatprep.subr.mxu0 %v66_v8  ;;  %517 = vmatprep.subr.mxu1 %v66_v8  ;;  %p596_p0 = pnand %p595_p13, %p589_p10 }
  0x2e   :  { %470 = vmatpush3.msra.mxu0 %v66_v8  ;;  %533 = vmatpush3.msra.mxu1 %v66_v8 }
  0x2f   :  { %471 = vmatprep.subr.mxu0 %v65_v9  ;;  %518 = vmatprep.subr.mxu1 %v65_v9 }
  0x30   :  { %472 = vmatpush3.msra.mxu0 %v65_v9  ;;  %534 = vmatpush3.msra.mxu1 %v65_v9 }
  0x31   :  { %473 = vmatprep.subr.mxu0 %v64_v10  ;;  %519 = vmatprep.subr.mxu1 %v64_v10 }
  0x32   :  { %474 = vmatpush3.msra.mxu0 %v64_v10  ;;  %535 = vmatpush3.msra.mxu1 %v64_v10 }
  0x33   :  { %475 = vmatprep.subr.mxu0 %v63_v11  ;;  %520 = vmatprep.subr.mxu1 %v63_v11 }
  0x34   :  { %476 = vmatpush3.msra.mxu0 %v63_v11  ;;  %536 = vmatpush3.msra.mxu1 %v63_v11 }
  0x35   :  { %477 = vmatprep.subr.mxu0 %v62_v12  ;;  %521 = vmatprep.subr.mxu1 %v62_v12 }
  0x36   :  { %478 = vmatpush3.msra.mxu0 %v62_v12  ;;  %537 = vmatpush3.msra.mxu1 %v62_v12 }
  0x37   :  { %479 = vmatprep.subr.mxu0 %v61_v13  ;;  %522 = vmatprep.subr.mxu1 %v61_v13 }
  0x38   :  { %480 = vmatpush3.msra.mxu0 %v61_v13  ;;  %538 = vmatpush3.msra.mxu1 %v61_v13 }
  0x39   :  { %481 = vmatprep.subr.mxu0 %v60_v14  ;;  %523 = vmatprep.subr.mxu1 %v60_v14 }
  0x3a   :  { %482 = vmatpush3.msra.mxu0 %v60_v14  ;;  %539 = vmatpush3.msra.mxu1 %v60_v14 }
  0x3b   :  { %483 = vmatprep.subr.mxu0 %v59_v15  ;;  %524 = vmatprep.subr.mxu1 %v59_v15 }
  0x3c   :  { %484 = vmatpush3.msra.mxu0 %v59_v15  ;;  %540 = vmatpush3.msra.mxu1 %v59_v15 }
  0x3d   :  { %485 = vmatprep.mubr.f32.mxu0 %v43_v16  ;;  %497 = vmatprep.mubr.f32.mxu1 %v51_v17 }
  0x3e   :  { %486 = vmatmul.mubr.f32.vlgmr.msra.gmra.mxu0 %v44_v18  ;;  %498 = vmatmul.mubr.f32.vlgmr.msra.gmra.mxu1 %v52_v19 }
  0x3f   :  { %488 = vmatprep.mubr.f32.mxu0 %v45_v20  ;;  %500 = vmatprep.mubr.f32.mxu1 %v53_v21 }
  0x42   :  { %489 = vmatmul.mubr.f32.gmra.mxu0 %v46_v22  ;;  %501 = vmatmul.mubr.f32.gmra.mxu1 %v54_v23 }
  0x43   :  { %491 = vmatprep.mubr.f32.mxu0 %v47_v24  ;;  %503 = vmatprep.mubr.f32.mxu1 %v55_v25 }
  0x46   :  { %492 = vmatmul.mubr.f32.gmra.mxu0 %v48_v26  ;;  %504 = vmatmul.mubr.f32.gmra.mxu1 %v56_v27 }
  0x47   :  { %494 = vmatprep.mubr.f32.mxu0 %v49_v28  ;;  %506 = vmatprep.mubr.f32.mxu1 %v57_v29 }
  0x4a   :  { %495 = vmatmul.mubr.f32.gmra.mxu0 %v50_v30  ;;  %507 = vmatmul.mubr.f32.gmra.mxu1 %v58_v31 }
  0xfe   :  { %v487_v33 = vpop.f32.mrf.mxu0  ;;  %v499_v34 = vpop.f32.mrf.mxu1 }
  0xff   :  { %v154_v35 = vadd.f32 %v487_v33, %v341_v32  ;;  %v194_v36 = vadd.f32 %v499_v34, %v341_v32 }
 0x100   :  { %v148_v37 = vpop.f32.mrf.mxu0  ;;  %v188_v38 = vpop.f32.mrf.mxu1 }
 0x101   :  { %v149_v39 = vadd.f32 %v341_v32, %v148_v37  ;;  %v189_v40 = vadd.f32 %v341_v32, %v188_v38  ;;  %v228_v43 = vmax.f32 %v154_v35, 0.0  ;;  %v236_v44 = vmax.f32 %v194_v36, 0.0 }
 0x102   :  { %v490_v41 = vpop.f32.mrf.mxu0  ;;  %v502_v42 = vpop.f32.mrf.mxu1 }
 0x103   :  { %v227_v45 = vmax.f32 %v149_v39, 0.0  ;;  %v235_v46 = vmax.f32 %v189_v40, 0.0  ;;  %v164_v47 = vadd.f32 %v490_v41, %v341_v32  ;;  %v204_v48 = vadd.f32 %v502_v42, %v341_v32 }
 0x104   :  { %v158_v49 = vpop.f32.mrf.mxu0  ;;  %v198_v50 = vpop.f32.mrf.mxu1 }
 0x105   :  { %v377_v51 = vpack.c.bf16 %v228_v43, %v227_v45  ;;  %v397_v52 = vpack.c.bf16 %v236_v44, %v235_v46  ;;  %v159_v53 = vadd.f32 %v341_v32, %v158_v49  ;;  %v199_v54 = vadd.f32 %v341_v32, %v198_v50 }
 0x106   :  { %v493_v55 = vpop.f32.mrf.mxu0  ;;  %v505_v56 = vpop.f32.mrf.mxu1  ;;  %v230_v59 = vmax.f32 %v164_v47, 0.0  ;;  %v238_v60 = vmax.f32 %v204_v48, 0.0 }
 0x107   :  { %378 = vst [vmem:[#allocation7] sm:$0xff] %v377_v51   ;;  %417 = vst [vmem:[#allocation7 + $0x20] sm:$0xff] %v397_v52   ;;  %v174_v57 = vadd.f32 %v493_v55, %v341_v32  ;;  %v214_v58 = vadd.f32 %v505_v56, %v341_v32  ;;  %v229_v61 = vmax.f32 %v159_v53, 0.0  ;;  %v237_v62 = vmax.f32 %v199_v54, 0.0 }
 0x108   :  { %v168_v63 = vpop.f32.mrf.mxu0  ;;  %v208_v0 = vpop.f32.mrf.mxu1 }
 0x109   :  { %v169_v1 = vadd.f32 %v341_v32, %v168_v63  ;;  %v209_v2 = vadd.f32 %v341_v32, %v208_v0  ;;  %v382_v3 = vpack.c.bf16 %v230_v59, %v229_v61  ;;  %v402_v4 = vpack.c.bf16 %v238_v60, %v237_v62 }
 0x10a   :  { %v496_v5 = vpop.f32.mrf.mxu0  ;;  %v508_v6 = vpop.f32.mrf.mxu1  ;;  %v232_v7 = vmax.f32 %v174_v57, 0.0  ;;  %v240_v8 = vmax.f32 %v214_v58, 0.0 }
 0x10b   :  { %v231_v9 = vmax.f32 %v169_v1, 0.0  ;;  %v239_v10 = vmax.f32 %v209_v2, 0.0  ;;  %414 = vst [vmem:[#allocation7 + $0x8] sm:$0xff] %v382_v3   ;;  %418 = vst [vmem:[#allocation7 + $0x28] sm:$0xff] %v402_v4   ;;  %v184_v11 = vadd.f32 %v496_v5, %v341_v32  ;;  %v224_v12 = vadd.f32 %v508_v6, %v341_v32 }
 0x10c   :  { %v178_v13 = vpop.f32.mrf.mxu0  ;;  %v218_v14 = vpop.f32.mrf.mxu1 }
 0x10d   :  { %v387_v15 = vpack.c.bf16 %v232_v7, %v231_v9  ;;  %v407_v16 = vpack.c.bf16 %v240_v8, %v239_v10  ;;  %v179_v17 = vadd.f32 %v341_v32, %v178_v13  ;;  %v219_v18 = vadd.f32 %v341_v32, %v218_v14 }
 0x10e   :  { %v234_v19 = vmax.f32 %v184_v11, 0.0  ;;  %v242_v20 = vmax.f32 %v224_v12, 0.0 }
 0x10f   :  { %415 = vst [vmem:[#allocation7 + $0x10] sm:$0xff] %v387_v15   ;;  %419 = vst [vmem:[#allocation7 + $0x30] sm:$0xff] %v407_v16   ;;  %v233_v21 = vmax.f32 %v179_v17, 0.0  ;;  %v241_v22 = vmax.f32 %v219_v18, 0.0 }
 0x111   :  { %v392_v23 = vpack.c.bf16 %v234_v19, %v233_v21  ;;  %v412_v24 = vpack.c.bf16 %v242_v20, %v241_v22 }
 0x113   :  { %416 = vst [vmem:[#allocation7 + $0x18] sm:$0xff] %v392_v23   ;;  %420 = vst [vmem:[#allocation7 + $0x38] sm:$0xff] %v412_v24  }
 0x114   :  { %599 = shalt.err (!%p596_p0)
}
 0x115   :  { %s619_s26 = smov 64   ;;  %s620_s27 = smov 4  }
 0x116   :  { %334 = dma.vmem_to_hbm [thread:$0]  %s329_s24, 1024, %s656_s3, [#allocation4], %s619_s26, %s619_s26, %s620_s27  }
 0x117   :  { %612 = dma.done.wait [#allocation4], 1024  }
 0x118   :  { %613 = vsyncadd [#allocation4], 4294966272 }
 0x119   :  { %338 = vsyncpa [#allocation3], 1 }
 0x11a   :  { %339 = vsyncpa [#allocation6], 1 }
 0x11b   :  { %340 = vsyncpa [#allocation4], 1 }

</bundles_post_ra>
